<compile_context>
chip_gen: v7x
topology: tpu7x:2x2x1
jax: 0.10.0
libtpu: 0.0.40
codegen_flags: <defaults>
</compile_context>

<pallas_src>
import jax
import jax.numpy as jnp
from jax.experimental import pallas as pl
from jax.experimental.pallas import tpu as pltpu

# ---------------- config ----------------
INPUT_DIM = 16
MODEL_INFO = (32, 32)          # hidden dims of the two FnnBlocks
HIDDEN = 32                    # config.lstm_hidden_size (rnn hidden size)
BN_EPS = 1e-5

# Packed-slab layout (row offsets into the (W_ROWS, HIDDEN) weight slab)
_FC0_LO, _FC0_HI = 0, INPUT_DIM                          # 0:16    BN-folded fc of block 0
_FC1_LO, _FC1_HI = _FC0_HI, _FC0_HI + MODEL_INFO[0]      # 16:48   BN-folded fc of block 1
_WIH_LO, _WIH_HI = _FC1_HI, _FC1_HI + MODEL_INFO[1]      # 48:80   RNN W_ih^T
_WHH_LO, _WHH_HI = _WIH_HI, _WIH_HI + HIDDEN             # 80:112  RNN W_hh^T
_LIN_LO, _LIN_HI = _WHH_HI, _WHH_HI + HIDDEN             # 112:144 liner
W_ROWS = _LIN_HI                                         # 144 (multiple of 8)
BIAS_ROWS = 8                                            # rows: fc0', fc1', rnn, liner, fc_w, fc_b


def _round_up(n, m):
    return ((n + m - 1) // m) * m


# ---------------- Pallas kernel bodies ----------------
def _critic_body(x_ref, w_ref, b_ref, h_out_ref, v_out_ref, h0_ref):
    x = x_ref[...]

    # FnnBlock 0: Linear with BatchNorm folded in, then ReLU (Dropout = identity in eval)
    h = jnp.dot(x, w_ref[_FC0_LO:_FC0_HI, :], preferred_element_type=jnp.float32)
    h = jnp.maximum(h + b_ref[0:1, :], 0.0)

    # FnnBlock 1
    h = jnp.dot(h, w_ref[_FC1_LO:_FC1_HI, :], preferred_element_type=jnp.float32)
    h = jnp.maximum(h + b_ref[1:2, :], 0.0)

    # nn.RNN (tanh, seq_len == 1): h_new = tanh(h @ W_ih + h0 @ W_hh + (b_ih + b_hh))
    pre = jnp.dot(h, w_ref[_WIH_LO:_WIH_HI, :], preferred_element_type=jnp.float32) + b_ref[2:3, :]
    if h0_ref is not None:
        pre = pre + jnp.dot(h0_ref[...], w_ref[_WHH_LO:_WHH_HI, :],
                            preferred_element_type=jnp.float32)
    h_new = jnp.tanh(pre)

    # _get_values: liner -> ReLU -> fc(H -> 1)
    y = jnp.dot(h_new, w_ref[_LIN_LO:_LIN_HI, :], preferred_element_type=jnp.float32)
    y = jnp.maximum(y + b_ref[3:4, :], 0.0)
    # Final fc as VPU multiply + lane reduction (avoid N=1 MXU matmul)
    vals = jnp.sum(y * b_ref[4:5, :], axis=-1, keepdims=True) + b_ref[5:6, 0:1]

    h_out_ref[...] = h_new          # (tb, 32)
    v_out_ref[...] = vals           # (tb, 1)


def critic_kernel(x_ref, h0_ref, w_ref, b_ref, h_out_ref, v_out_ref):
    _critic_body(x_ref, w_ref, b_ref, h_out_ref, v_out_ref, h0_ref)


def critic_kernel_zero_h0(x_ref, w_ref, b_ref, h_out_ref, v_out_ref):
    _critic_body(x_ref, w_ref, b_ref, h_out_ref, v_out_ref, None)


# ---------------- wrapper ----------------
def fnn_critic_forward(x, h_state, packed_params, *, tile_b=4096):
    """x: (B, INPUT_DIM) f32; h_state: (1, B, HIDDEN) f32 or None (fast zero-state path)."""
    w_slab, b_slab = packed_params
    B = x.shape[0]
    x = x.reshape(B, -1)                      # x.view(B, -1)
    has_h0 = h_state is not None

    # Tile: multiple of 8 sublanes, <= ceil(B/2) rounded up (so >=2 tiles for v7x megacore),
    # capped at tile_b (~4096) to stay well inside v7x's 64 MiB VMEM with lane-padded blocks.
    tb = min(_round_up(tile_b, 8), _round_up(pl.cdiv(B, 2), 8))
    tb = max(tb, 8)
    n_tiles = pl.cdiv(B, tb)                  # edge blocks are masked; no jnp.pad copies

    x_spec = pl.BlockSpec((tb, INPUT_DIM), lambda i: (i, 0))         # streamed
    h0_spec = pl.BlockSpec((tb, HIDDEN), lambda i: (i, 0))           # streamed (only if h0)
    w_spec = pl.BlockSpec((W_ROWS, HIDDEN), lambda i: (0, 0))        # VMEM resident
    b_spec = pl.BlockSpec((BIAS_ROWS, HIDDEN), lambda i: (0, 0))     # VMEM resident
    out_shape = (jax.ShapeDtypeStruct((B, HIDDEN), jnp.float32),
                 jax.ShapeDtypeStruct((B, 1), jnp.float32))
    out_specs = (pl.BlockSpec((tb, HIDDEN), lambda i: (i, 0)),
                 pl.BlockSpec((tb, 1), lambda i: (i, 0)))

    # Advisory cost estimate (HBM-bound kernel; helps XLA schedule surrounding ops).
    flops_per_row = (2 * INPUT_DIM * HIDDEN + 2 * HIDDEN * HIDDEN * (4 if has_h0 else 3)
                     + 2 * HIDDEN)
    bytes_per_row = 4 * (INPUT_DIM + (HIDDEN if has_h0 else 0) + HIDDEN + 1)
    cost = pl.CostEstimate(
        flops=B * flops_per_row,
        transcendentals=B * HIDDEN,
        bytes_accessed=B * bytes_per_row + 4 * (W_ROWS + BIAS_ROWS) * HIDDEN,
    )
    cparams = pltpu.CompilerParams(
        dimension_semantics=("parallel",),            # megacore-shardable on v7x
        vmem_limit_bytes=48 * 1024 * 1024,
    )

    if has_h0:
        h0 = h_state.reshape(B, HIDDEN)
        h_new_2d, values = pl.pallas_call(
            critic_kernel,
            out_shape=out_shape,
            grid=(n_tiles,),
            in_specs=[x_spec, h0_spec, w_spec, b_spec],
            out_specs=out_specs,
            compiler_params=cparams,
            cost_estimate=cost,
        )(x, h0, w_slab, b_slab)
    else:
        # Zero-initial-state fast path: no h0 stream, no W_hh matmul.
        h_new_2d, values = pl.pallas_call(
            critic_kernel_zero_h0,
            out_shape=out_shape,
            grid=(n_tiles,),
            in_specs=[x_spec, w_spec, b_spec],
            out_specs=out_specs,
            compiler_params=cparams,
            cost_estimate=cost,
        )(x, w_slab, b_slab)

    return values, h_new_2d.reshape(1, B, HIDDEN)     # PyTorch nn.RNN layout (1, B, H)


# ---------------- parameter packing (one-time static transform) ----------------
def pack_params(params):
    """Fold BatchNorms into Linears, pack all weights / bias rows into two VMEM slabs."""
    (fc0_w, fc0_b, bn0_g, bn0_b, bn0_m, bn0_v,
     fc1_w, fc1_b, bn1_g, bn1_b, bn1_m, bn1_v,
     wih, whh, bih, bhh,
     lin_w, lin_b, fcw, fcb) = params

    s0 = bn0_g * jax.lax.rsqrt(bn0_v + BN_EPS)                 # (1, 32)
    s1 = bn1_g * jax.lax.rsqrt(bn1_v + BN_EPS)
    w0 = fc0_w * s0                                            # (16, 32)
    b0 = (fc0_b - bn0_m) * s0 + bn0_b                          # (1, 32)
    w1 = fc1_w * s1                                            # (32, 32)
    b1 = (fc1_b - bn1_m) * s1 + bn1_b

    rnn_b = bih + bhh                                          # (1, 32)

    w_slab = jnp.concatenate([w0, w1, wih, whh, lin_w], axis=0).astype(jnp.float32)  # (144, 32)
    assert w_slab.shape == (W_ROWS, HIDDEN)

    b_slab = jnp.zeros((BIAS_ROWS, HIDDEN), jnp.float32)
    b_slab = b_slab.at[0].set(b0.reshape(-1))
    b_slab = b_slab.at[1].set(b1.reshape(-1))
    b_slab = b_slab.at[2].set(rnn_b.reshape(-1))
    b_slab = b_slab.at[3].set(lin_b.reshape(-1))
    b_slab = b_slab.at[4].set(fcw.reshape(-1))                 # fc weight as a row (H,)
    b_slab = b_slab.at[5].set(jnp.full((HIDDEN,), fcb.reshape(())))  # fc bias (lane 0 used)
    return w_slab, b_slab


# ---------------- deterministic parameter init (PyTorch-style raw params) ----------------
def _uniform(key, shape, bound):
    return jax.random.uniform(key, shape, jnp.float32, -bound, bound)


def init_params(key):
    ks = iter(jax.random.split(key, 32))
    params = []

    def linear(in_dim, out_dim):
        b = 1.0 / jnp.sqrt(jnp.float32(in_dim))
        w = _uniform(next(ks), (in_dim, out_dim), b)          # stored (in, out)
        bias = _uniform(next(ks), (1, out_dim), b)
        return w, bias

    def bnorm(dim):
        g = 1.0 + 0.1 * jax.random.normal(next(ks), (1, dim), jnp.float32)
        beta = 0.1 * jax.random.normal(next(ks), (1, dim), jnp.float32)
        rm = 0.1 * jax.random.normal(next(ks), (1, dim), jnp.float32)
        rv = jax.random.uniform(next(ks), (1, dim), jnp.float32, 0.5, 1.5)
        return g, beta, rm, rv

    last = INPUT_DIM
    for hdim in MODEL_INFO:
        w, b = linear(last, hdim)
        params += [w, b]
        params += list(bnorm(hdim))
        last = hdim

    flat = MODEL_INFO[-1]
    rb = 1.0 / jnp.sqrt(jnp.float32(HIDDEN))
    params += [
        _uniform(next(ks), (flat, HIDDEN), rb),    # W_ih^T
        _uniform(next(ks), (HIDDEN, HIDDEN), rb),  # W_hh^T
        _uniform(next(ks), (1, HIDDEN), rb),       # b_ih
        _uniform(next(ks), (1, HIDDEN), rb),       # b_hh
    ]
    w, b = linear(HIDDEN, HIDDEN)                  # liner
    params += [w, b]
    w, b = linear(HIDDEN, 1)                       # fc
    params += [w, b]
    return tuple(params)


# ---------------- pure-JAX reference (unfused BN) for verification ----------------
def reference(x, h_state, params):
    (fc0_w, fc0_b, bn0_g, bn0_b, bn0_m, bn0_v,
     fc1_w, fc1_b, bn1_g, bn1_b, bn1_m, bn1_v,
     wih, whh, bih, bhh,
     lin_w, lin_b, fcw, fcb) = params
    h = x @ fc0_w + fc0_b
    h = (h - bn0_m) / jnp.sqrt(bn0_v + BN_EPS) * bn0_g + bn0_b
    h = jnp.maximum(h, 0.0)
    h = h @ fc1_w + fc1_b
    h = (h - bn1_m) / jnp.sqrt(bn1_v + BN_EPS) * bn1_g + bn1_b
    h = jnp.maximum(h, 0.0)
    if h_state is None:
        h0 = jnp.zeros((x.shape[0], HIDDEN), jnp.float32)
    else:
        h0 = h_state.reshape(x.shape[0], HIDDEN)
    h_new = jnp.tanh(h @ wih + bih + h0 @ whh + bhh)
    y = jnp.maximum(h_new @ lin_w + lin_b, 0.0)
    values = y @ fcw + fcb
    return values, h_new.reshape(1, x.shape[0], HIDDEN)


if __name__ == "__main__":
    key = jax.random.PRNGKey(0)
    k_x, k_h, k_p, k_x2, k_h2 = jax.random.split(key, 5)

    params = init_params(k_p)
    packed = pack_params(params)

    # --- small batch (single tile), explicit h_state ---
    B = 4
    x = jax.random.normal(k_x, (B, INPUT_DIM), jnp.float32)
    h_state = 0.1 * jax.random.normal(k_h, (1, B, HIDDEN), jnp.float32)
    values, h_new = fnn_critic_forward(x, h_state, packed)
    jax.block_until_ready((values, h_new))
    v_ref, h_ref = reference(x, h_state, params)
    assert values.shape == (B, 1) and h_new.shape == (1, B, HIDDEN)
    assert jnp.allclose(values, v_ref, atol=1e-4, rtol=1e-4)
    assert jnp.allclose(h_new, h_ref, atol=1e-4, rtol=1e-4)

    # --- larger batch, small tile (multi-tile parallel grid + masked edge block) ---
    B2 = 20
    x2 = jax.random.normal(k_x2, (B2, INPUT_DIM), jnp.float32)
    h2 = 0.1 * jax.random.normal(k_h2, (1, B2, HIDDEN), jnp.float32)
    values2, h_new2 = fnn_critic_forward(x2, h2, packed, tile_b=8)
    jax.block_until_ready((values2, h_new2))
    v_ref2, h_ref2 = reference(x2, h2, params)
    assert values2.shape == (B2, 1) and h_new2.shape == (1, B2, HIDDEN)
    assert jnp.allclose(values2, v_ref2, atol=1e-4, rtol=1e-4)
    assert jnp.allclose(h_new2, h_ref2, atol=1e-4, rtol=1e-4)

    # --- zero-initial-state fast path (h_state=None, no h0 stream, no W_hh matmul) ---
    values3, h_new3 = fnn_critic_forward(x2, None, packed)
    jax.block_until_ready((values3, h_new3))
    v_ref3, h_ref3 = reference(x2, None, params)
    assert values3.shape == (B2, 1) and h_new3.shape == (1, B2, HIDDEN)
    assert jnp.allclose(values3, v_ref3, atol=1e-4, rtol=1e-4)
    assert jnp.allclose(h_new3, h_ref3, atol=1e-4, rtol=1e-4)

    print("KERNEL_OK")
</pallas_src>

<mosaic_0001>
module attributes {stable_mosaic.version = 11 : i64} {
  func.func @critic_kernel(%arg0: i32, %arg1: memref<8x16xf32, #tpu.memory_space<vmem>>, %arg2: memref<8x32xf32, #tpu.memory_space<vmem>>, %arg3: memref<144x32xf32, #tpu.memory_space<vmem>>, %arg4: memref<8x32xf32, #tpu.memory_space<vmem>>, %arg5: memref<8x32xf32, #tpu.memory_space<vmem>>, %arg6: memref<8x1xf32, #tpu.memory_space<vmem>>) attributes {dimension_semantics = [#tpu.dimension_semantics<parallel>], iteration_bounds = array<i64: 1>, scalar_prefetch = 0 : i64, scratch_operands = 0 : i64, tpu.core_type = #tpu.core_type<tc>, window_params = [{transform_indices = @transform_0, window_bounds = array<i64: 8, 16>}, {transform_indices = @transform_1, window_bounds = array<i64: 8, 32>}, {pipeline_mode = #tpu.pipeline_mode<synchronous>, transform_indices = @transform_2, window_bounds = array<i64: 144, 32>}, {pipeline_mode = #tpu.pipeline_mode<synchronous>, transform_indices = @transform_3, window_bounds = array<i64: 8, 32>}, {transform_indices = @transform_4, window_bounds = array<i64: 8, 32>}, {transform_indices = @transform_5, window_bounds = array<i64: 8, 1>}]} {
    %c0 = arith.constant 0 : index
    %c0_0 = arith.constant 0 : index
    %0 = vector.load %arg1[%c0, %c0_0] : memref<8x16xf32, #tpu.memory_space<vmem>>, vector<8x16xf32>
    %c0_1 = arith.constant 0 : index
    %c0_2 = arith.constant 0 : index
    %1 = vector.load %arg3[%c0_1, %c0_2] : memref<144x32xf32, #tpu.memory_space<vmem>>, vector<16x32xf32>
    %cst = arith.constant dense<0.000000e+00> : vector<8x32xf32>
    %2 = tpu.matmul %0, %1, %cst {dimension_numbers = #tpu.dot_dimension_numbers<[1], [0], [0], [1], [0, 0, 1, 1], [], []>} : vector<8x16xf32>, vector<16x32xf32>, vector<8x32xf32> -> vector<8x32xf32>
    %c0_3 = arith.constant 0 : index
    %c0_4 = arith.constant 0 : index
    %3 = vector.load %arg4[%c0_3, %c0_4] : memref<8x32xf32, #tpu.memory_space<vmem>>, vector<1x32xf32>
    %4 = vector.broadcast %3 : vector<1x32xf32> to vector<8x32xf32>
    %5 = arith.addf %2, %4 : vector<8x32xf32>
    %cst_5 = arith.constant 0.000000e+00 : f32
    %6 = vector.broadcast %cst_5 : f32 to vector<8x32xf32>
    %7 = arith.maximumf %5, %6 : vector<8x32xf32>
    %c16 = arith.constant 16 : index
    %c0_6 = arith.constant 0 : index
    %8 = vector.load %arg3[%c16, %c0_6] : memref<144x32xf32, #tpu.memory_space<vmem>>, vector<32x32xf32>
    %cst_7 = arith.constant dense<0.000000e+00> : vector<8x32xf32>
    %9 = tpu.matmul %7, %8, %cst_7 {dimension_numbers = #tpu.dot_dimension_numbers<[1], [0], [0], [1], [0, 0, 1, 1], [], []>} : vector<8x32xf32>, vector<32x32xf32>, vector<8x32xf32> -> vector<8x32xf32>
    %c1 = arith.constant 1 : index
    %c0_8 = arith.constant 0 : index
    %10 = vector.load %arg4[%c1, %c0_8] : memref<8x32xf32, #tpu.memory_space<vmem>>, vector<1x32xf32>
    %11 = vector.broadcast %10 : vector<1x32xf32> to vector<8x32xf32>
    %12 = arith.addf %9, %11 : vector<8x32xf32>
    %cst_9 = arith.constant 0.000000e+00 : f32
    %13 = vector.broadcast %cst_9 : f32 to vector<8x32xf32>
    %14 = arith.maximumf %12, %13 : vector<8x32xf32>
    %c48 = arith.constant 48 : index
    %c0_10 = arith.constant 0 : index
    %15 = vector.load %arg3[%c48, %c0_10] : memref<144x32xf32, #tpu.memory_space<vmem>>, vector<32x32xf32>
    %cst_11 = arith.constant dense<0.000000e+00> : vector<8x32xf32>
    %16 = tpu.matmul %14, %15, %cst_11 {dimension_numbers = #tpu.dot_dimension_numbers<[1], [0], [0], [1], [0, 0, 1, 1], [], []>} : vector<8x32xf32>, vector<32x32xf32>, vector<8x32xf32> -> vector<8x32xf32>
    %c2 = arith.constant 2 : index
    %c0_12 = arith.constant 0 : index
    %17 = vector.load %arg4[%c2, %c0_12] : memref<8x32xf32, #tpu.memory_space<vmem>>, vector<1x32xf32>
    %18 = vector.broadcast %17 : vector<1x32xf32> to vector<8x32xf32>
    %19 = arith.addf %16, %18 : vector<8x32xf32>
    %c0_13 = arith.constant 0 : index
    %c0_14 = arith.constant 0 : index
    %20 = vector.load %arg2[%c0_13, %c0_14] : memref<8x32xf32, #tpu.memory_space<vmem>>, vector<8x32xf32>
    %c80 = arith.constant 80 : index
    %c0_15 = arith.constant 0 : index
    %21 = vector.load %arg3[%c80, %c0_15] : memref<144x32xf32, #tpu.memory_space<vmem>>, vector<32x32xf32>
    %cst_16 = arith.constant dense<0.000000e+00> : vector<8x32xf32>
    %22 = tpu.matmul %20, %21, %cst_16 {dimension_numbers = #tpu.dot_dimension_numbers<[1], [0], [0], [1], [0, 0, 1, 1], [], []>} : vector<8x32xf32>, vector<32x32xf32>, vector<8x32xf32> -> vector<8x32xf32>
    %23 = arith.addf %19, %22 : vector<8x32xf32>
    %24 = math.tanh %23 : vector<8x32xf32>
    %c112 = arith.constant 112 : index
    %c0_17 = arith.constant 0 : index
    %25 = vector.load %arg3[%c112, %c0_17] : memref<144x32xf32, #tpu.memory_space<vmem>>, vector<32x32xf32>
    %cst_18 = arith.constant dense<0.000000e+00> : vector<8x32xf32>
    %26 = tpu.matmul %24, %25, %cst_18 {dimension_numbers = #tpu.dot_dimension_numbers<[1], [0], [0], [1], [0, 0, 1, 1], [], []>} : vector<8x32xf32>, vector<32x32xf32>, vector<8x32xf32> -> vector<8x32xf32>
    %c3 = arith.constant 3 : index
    %c0_19 = arith.constant 0 : index
    %27 = vector.load %arg4[%c3, %c0_19] : memref<8x32xf32, #tpu.memory_space<vmem>>, vector<1x32xf32>
    %28 = vector.broadcast %27 : vector<1x32xf32> to vector<8x32xf32>
    %29 = arith.addf %26, %28 : vector<8x32xf32>
    %cst_20 = arith.constant 0.000000e+00 : f32
    %30 = vector.broadcast %cst_20 : f32 to vector<8x32xf32>
    %31 = arith.maximumf %29, %30 : vector<8x32xf32>
    %c4 = arith.constant 4 : index
    %c0_21 = arith.constant 0 : index
    %32 = vector.load %arg4[%c4, %c0_21] : memref<8x32xf32, #tpu.memory_space<vmem>>, vector<1x32xf32>
    %33 = vector.broadcast %32 : vector<1x32xf32> to vector<8x32xf32>
    %34 = arith.mulf %31, %33 : vector<8x32xf32>
    %cst_22 = arith.constant dense<0.000000e+00> : vector<8xf32>
    %35 = vector.multi_reduction <add>, %34, %cst_22 [1] : vector<8x32xf32> to vector<8xf32>
    %36 = vector.shape_cast %35 : vector<8xf32> to vector<8x1xf32>
    %c5 = arith.constant 5 : index
    %c0_23 = arith.constant 0 : index
    %37 = vector.load %arg4[%c5, %c0_23] : memref<8x32xf32, #tpu.memory_space<vmem>>, vector<1x1xf32>
    %38 = vector.broadcast %37 : vector<1x1xf32> to vector<8x1xf32>
    %39 = arith.addf %36, %38 : vector<8x1xf32>
    %c0_24 = arith.constant 0 : index
    %c0_25 = arith.constant 0 : index
    %40 = vector.load %arg5[%c0_24, %c0_25] : memref<8x32xf32, #tpu.memory_space<vmem>>, vector<8x32xf32>
    tpu.vector_store %arg5[%c0_24, %c0_25], %24 {strides = array<i32>} : memref<8x32xf32, #tpu.memory_space<vmem>>, vector<8x32xf32>,
    %c0_26 = arith.constant 0 : index
    %c0_27 = arith.constant 0 : index
    %41 = vector.load %arg6[%c0_26, %c0_27] : memref<8x1xf32, #tpu.memory_space<vmem>>, vector<8x1xf32>
    tpu.vector_store %arg6[%c0_26, %c0_27], %39 {strides = array<i32>} : memref<8x1xf32, #tpu.memory_space<vmem>>, vector<8x1xf32>,
    return
  }
  func.func @transform_0(%arg0: i32) -> (i32, i32) {
    %c0_i32 = arith.constant 0 : i32
    %c0_i32_0 = arith.constant 0 : i32
    return %arg0, %c0_i32 : i32, i32
  }
  func.func @transform_1(%arg0: i32) -> (i32, i32) {
    %c0_i32 = arith.constant 0 : i32
    %c0_i32_0 = arith.constant 0 : i32
    return %arg0, %c0_i32 : i32, i32
  }
  func.func @transform_2(%arg0: i32) -> (i32, i32) {
    %c0_i32 = arith.constant 0 : i32
    %c0_i32_0 = arith.constant 0 : i32
    %c0_i32_1 = arith.constant 0 : i32
    return %c0_i32, %c0_i32_0 : i32, i32
  }
  func.func @transform_3(%arg0: i32) -> (i32, i32) {
    %c0_i32 = arith.constant 0 : i32
    %c0_i32_0 = arith.constant 0 : i32
    %c0_i32_1 = arith.constant 0 : i32
    return %c0_i32, %c0_i32_0 : i32, i32
  }
  func.func @transform_4(%arg0: i32) -> (i32, i32) {
    %c0_i32 = arith.constant 0 : i32
    %c0_i32_0 = arith.constant 0 : i32
    return %arg0, %c0_i32 : i32, i32
  }
  func.func @transform_5(%arg0: i32) -> (i32, i32) {
    %c0_i32 = arith.constant 0 : i32
    %c0_i32_0 = arith.constant 0 : i32
    return %arg0, %c0_i32 : i32, i32
  }
}

</mosaic_0001>

<bundles_post_ra>
// kernel: tpu_custom_call.1
= control target key start
LH: loop header
LB: loop body
LE: loop exit
PB: predicated region body
PF: predicated region fallthrough
CT: control target
= control target key end

     0   :  { %11 = vsyncpa [#allocation3], 0  ;;  %v652_v2 = vmov 0.0|0.0   ;;  %vm653_vm0 = vmmov 0   ;;  %v654_v6 = vmov 0.0   ;;  %vm28_vm1 = vcmask 130048   ;;  %s801_s0 = inlined_call_operand.vmem [shape: f32[4,16], index: 0, kind: input, shape index: {}]   ;;  %s802_s1 = inlined_call_operand.vmem [shape: f32[4,32], index: 1, kind: input, shape index: {}]   ;;  %s803_s2 = inlined_call_operand.vmem [shape: f32[144,32], index: 2, kind: input, shape index: {}]   ;;  %s804_s3 = inlined_call_operand.vmem [shape: f32[8,32], index: 3, kind: input, shape index: {}]   ;;  %s805_s4 = inlined_call_operand.hbm [shape: f32[4,32], index: 4, kind: output, shape index: {0}]   ;;  %s806_s5 = inlined_call_operand.vmem [shape: f32[4,1], index: 5, kind: output, shape index: {1}]  }
   0x1   :  { %v21_v0 = vld [vmem:[%s803_s2] sm:$0xff]  ;;  %v22_v1 = vld [vmem:[%s803_s2 + $0x8] sm:$0xff]  ;;  %590 = vmatprep.subr.bf16.mxu0 %v652_v2  ;;  %593 = vmatprep.subr.bf16.mxu1 %v652_v2  ;;  %v103_v4 = vld [vmem:[%s803_s2 + $0x10] sm:$0xff]  ;;  %vm112_vm2 = vcmask 261120   ;;  %vm448_vm3 = vcmask 7168  }
   0x2   :  { %v591_v3 = vpack.c.bf16 %v22_v1, %v21_v0  ;;  %v104_v5 = vld [vmem:[%s803_s2 + $0x18] sm:$0xff]  ;;  %543 = vmatprep.mubr.msk.f32.mxu0 %vm653_vm0, %v654_v6  ;;  %554 = vmatprep.mubr.msk.f32.mxu1 %vm653_vm0, %v654_v6  ;;  %v20_v8 = vld [vmem:[%s801_s0] sm:$0xff]  ;;  %v106_v10 = vld [vmem:[%s803_s2 + $0x28] sm:$0xff] }
   0x3   :  { %v594_v7 = vpack.c.bf16 %v104_v5, %v103_v4  ;;  %v105_v9 = vld [vmem:[%s803_s2 + $0x20] sm:$0xff]  ;;  %v187_v12 = vld [vmem:[%s803_s2 + $0x30] sm:$0xff]  ;;  %v188_v13 = vld [vmem:[%s803_s2 + $0x38] sm:$0xff] }
   0x4   :  { %592 = vmatpush3.bf16.msra.mxu0 %v591_v3  ;;  %v597_v11 = vpack.c.bf16 %v106_v10, %v105_v9  ;;  %v600_v14 = vpack.c.bf16 %v188_v13, %v187_v12  ;;  %v505_v15 = vld [vmem:[%s804_s3] ss:$0 sm:$0xff]  ;;  %v190_v21 = vld [vmem:[%s803_s2 + $0x48] sm:$0xff]  ;;  %v507_v23 = vld [vmem:[%s804_s3 + $0x1] ss:$0 sm:$0xff] }
   0x5   :  { %595 = vmatpush3.bf16.msra.mxu1 %v594_v7  ;;  %599 = vmatprep.subr.bf16.mxu0 %v652_v2  ;;  %v189_v20 = vld [vmem:[%s803_s2 + $0x40] sm:$0xff]  ;;  %v270_v24 = vld [vmem:[%s803_s2 + $0x50] sm:$0xff]  ;;  %v271_v25 = vld [vmem:[%s803_s2 + $0x58] sm:$0xff] }
   0x6   :  { %596 = vmatprep.subr.bf16.mxu1 %v652_v2  ;;  %v603_v22 = vpack.c.bf16 %v190_v21, %v189_v20  ;;  %v606_v29 = vpack.c.bf16 %v271_v25, %v270_v24  ;;  %v272_v31 = vld [vmem:[%s803_s2 + $0x60] sm:$0xff]  ;;  %v273_v32 = vld [vmem:[%s803_s2 + $0x68] sm:$0xff]  ;;  %v349_v35 = vld [vmem:[%s803_s2 + $0x70] sm:$0xff] }
   0x7   :  { %544 = vmatmul.mubr.msk.f32.vlgmr.msra.gmra.mrb[0].mxu0 %vm28_vm1, %v20_v8  ;;  %v609_v33 = vpack.c.bf16 %v273_v32, %v272_v31  ;;  %v269_v34 = vld [vmem:[%s802_s1] sm:$0xff]  ;;  %v350_v36 = vld [vmem:[%s803_s2 + $0x78] sm:$0xff]  ;;  %v352_v39 = vld [vmem:[%s803_s2 + $0x88] sm:$0xff] }
   0x8   :  { %565 = vmatprep.mubr.msk.f32.mxu0 %vm653_vm0, %v654_v6  ;;  %601 = vmatpush3.bf16.msra.mxu0 %v600_v14  ;;  %v612_v37 = vpack.c.bf16 %v350_v36, %v349_v35  ;;  %v351_v38 = vld [vmem:[%s803_s2 + $0x80] sm:$0xff] }
   0x9   :  { %598 = vmatpush3.bf16.msra.mxu1 %v597_v11  ;;  %602 = vmatprep.subr.bf16.mxu0 %v652_v2  ;;  %v615_v40 = vpack.c.bf16 %v352_v39, %v351_v38  ;;  %v509_v41 = vld [vmem:[%s804_s3 + $0x2] ss:$0 sm:$0xff]  ;;  %v512_v46 = vld [vmem:[%s804_s3 + $0x3] ss:$0 sm:$0xff]  ;;  %v514_v50 = vld [vmem:[%s804_s3 + $0x4] ss:$0 sm:$0xff] }
   0xa   :  { %611 = vmatprep.subr.bf16.mxu1 %v652_v2  ;;  %v515_v54 = vld [vmem:[%s804_s3 + $0x5] ss:$0 sm:$0xff] }
   0xc   :  { %604 = vmatpush3.bf16.msra.mxu0 %v603_v22 }
   0xd   :  { %605 = vmatprep.subr.bf16.mxu0 %v652_v2 }
  0xda   :  { %v98_v16 = vpop.f32.mrb[0].mxu0 }
  0xdb   :  { %v99_v17 = vadd.f32 %v505_v15, %v98_v16  ;;  %v545_v18 = vpop.f32.mrb[1].mxu0 }
  0xdd   :  { %v102_v19 = vmax.f32 %v99_v17, 0.0 }
  0xdf   :  { %555 = vmatmul.mubr.msk.f32.vlgmr.msra.gmra.mrb[0].mxu1 %vm112_vm2, %v102_v19 }
  0xe0   :  { %587 = vmatprep.mubr.msk.f32.mxu1 %vm653_vm0, %v654_v6  ;;  %613 = vmatpush3.bf16.msra.mxu1 %v612_v37 }
  0xe1   :  { %614 = vmatprep.subr.bf16.mxu1 %v652_v2 }
  0xe4   :  { %616 = vmatpush3.bf16.msra.mxu1 %v615_v40 }
 0x1b2   :  { %v182_v26 = vpop.f32.mrb[0].mxu1 }
 0x1b3   :  { %v183_v27 = vadd.f32 %v507_v23, %v182_v26  ;;  %v556_v28 = vpop.f32.mrb[1].mxu1 }
 0x1b5   :  { %v186_v30 = vmax.f32 %v183_v27, 0.0 }
 0x1b7   :  { %566 = vmatmul.mubr.msk.f32.vlgmr.msra.gmra.mrb[2].mxu0 %vm112_vm2, %v186_v30 }
 0x1b8   :  { %607 = vmatpush3.bf16.msra.mxu0 %v606_v29  ;;  %576 = vmatprep.mubr.msk.f32.mxu0 %vm653_vm0, %v654_v6 }
 0x1b9   :  { %608 = vmatprep.subr.bf16.mxu0 %v652_v2 }
 0x1bc   :  { %610 = vmatpush3.bf16.msra.mxu0 %v609_v33 }
 0x1bf   :  { %577 = vmatmul.mubr.msk.f32.vlgmr.msra.gmra.mrb[2].mxu0 %vm112_vm2, %v269_v34 }
 0x292   :  { %v343_v42 = vpop.f32.mrb[2].mxu0 }
 0x293   :  { %v617_v43 = vadd.f32 %v509_v41, %v343_v42  ;;  %v578_v44 = vpop.f32.mrb[3].mxu0 }
 0x295   :  { %626 = vtanh.f32 %v617_v43 }
 0x29f   :  { %v627_v45 = vpop.eup %626 }
 0x2a0   :  { %447 = vst.msk [vmem:[#allocation2] sm:$0xff] %vm112_vm2, %v627_v45  ;;  %588 = vmatmul.mubr.msk.f32.vlgmr.msra.gmra.mrb[2].mxu1 %vm112_vm2, %v627_v45 }
 0x373   :  { %v427_v47 = vpop.f32.mrb[2].mxu1 }
 0x374   :  { %v428_v48 = vadd.f32 %v512_v46, %v427_v47  ;;  %v589_v49 = vpop.f32.mrb[3].mxu1 }
 0x376   :  { %v431_v51 = vmax.f32 %v428_v48, 0.0 }
 0x378   :  { %v437_v52 = vmul.f32 %v514_v50, %v431_v51 }
 0x37a   :  { %v438_v53 = vsel %vm112_vm2, %v437_v52, 0.0 }
 0x37b   :  { %439 = vadd.xlane.f32.xlu0 %v438_v53 }
 0x408   :  { %v440_v55 = vpop.xlane.xlu0 %439 }
 0x409   :  { %v446_v56 = vadd.f32 %v515_v54, %v440_v55 }
 0x40b   :  { %449 = vst.msk [vmem:[#allocation4] sm:$0xff] %vm448_vm3, %v446_v56 }
 0x40c   :  { %454 = vsyncadd [#allocation3], 64  ;;  %s655_s16 = smov [#allocation2]  }
 0x40d   :  { %s455_s17 = sshll.u32 %s655_s16, 4  ;;  %s456_s17 = int_to_ptr.vmem [resolvable:$true] %s455_s17 }
 0x40e   :  { %s628_s20 = scalar_lea.vmem %s456_s17, 64  ;;  %s632_s21 = scalar_lea.vmem %s456_s17, 128 }
 0x40f   :  { %p629_p0 = scmp.ne.s32.totalorder %s456_s17, %s628_s20  ;;  %p633_p1 = scmp.lt.s32.totalorder %s456_s17, %s456_s17 }
 0x410   :  { %p634_p2 = scmp.lt.s32.totalorder %s632_s21, %s628_s20 }
 0x412   :  { %v479_v57 = vld [vmem:[#allocation4] sm:$0xf]  ;;  %p635_p3 = por %p634_p2, %p633_p1 }
 0x413   :  { %480 = vst [vmem:[%s806_s5] sm:$0xf] %v479_v57 }
 0x414   :  { %p636_p4 = pnand %p635_p3, %p629_p0 }
 0x416   :  { %639 = shalt.err (!%p636_p4)
}
 0x417   :  { %s640_s23 = scalar_lea.hbm %s805_s4, 64 }
 0x418   :  { %p641_p5 = scmp.ne.s32.totalorder %s805_s4, %s640_s23  ;;  %p644_p6 = scmp.lt.u32.totalorder %s640_s23, %s805_s4 }
 0x41a   :  { %p646_p7 = pnand %p644_p6, %p641_p5 }
 0x41c   :  { %649 = shalt.err (!%p646_p7)
}
 0x41d   :  { %s656_s5 = smov 64   ;;  %s657_s28 = smov 4  }
 0x41e   :  { %461 = dma.vmem_to_hbm [thread:$0]  %s456_s17, 64, %s805_s4, [#allocation3], %s656_s5, %s656_s5, %s657_s28  }
 0x41f   :  { %650 = dma.done.wait [#allocation3], 128  }
 0x420   :  { %651 = vsyncadd [#allocation3], 4294967168 }
 0x421   :  { %500 = vsyncpa [#allocation3], 1 }

</bundles_post_ra>
